<compile_context>
chip_gen: v6e
topology: v6e:2x2x1
jax: 0.10.0
libtpu: 0.0.40
codegen_flags: <defaults>
</compile_context>

<pallas_src>
import functools

import jax
import jax.numpy as jnp
from jax import lax
from jax.experimental import pallas as pl
from jax.experimental.pallas import tpu as pltpu


def _ceil_to(n, m):
    return ((n + m - 1) // m) * m


@functools.lru_cache(maxsize=1)
def _vmem_capacity_bytes():
    # Generation-aware: v5e/v6e have 128 MiB physical VMEM, v7x only 64 MiB.
    try:
        return int(pltpu.get_tpu_info().vmem_capacity_bytes)
    except Exception:
        return 64 << 20  # conservative (v7x) fallback


def _pick_tile(S, stream_rows, Mp, budget_bytes):
    """Largest TS (multiple of 128, dividing S) whose pipeline footprint fits."""
    def footprint(ts):
        # double-buffered input blocks (f32-equivalent upper bound on sublane
        # padding) + single-buffered (Mp, TS) stacked scratch + tiny output.
        inp = sum(2 * _ceil_to(r, 8) * ts * 4 for r in stream_rows)
        return inp + Mp * ts * 4 + 2 * Mp * Mp * 4

    ts = 128
    for cand in range(S, 127, -128):
        if S % cand == 0 and footprint(cand) <= budget_bytes:
            ts = cand
            break
    return ts, footprint(ts)


def _make_gram_kernel(C, use_f, use_beta, off_g, off_d1, off_d2):
    """Kernel accumulating Gram = M @ M^T over the spatial grid axis."""

    def kernel(*refs):
        it = iter(refs)
        t_ref = next(it)
        o_ref = next(it)
        f_ref = next(it) if use_f else None
        if use_beta:
            g_ref = next(it)
            x_ref = next(it)
        gram_ref = next(it)   # (Mp, Mp) f32 output block, persists across s
        m_ref = next(it)      # (Mp, TS) f32 stacked-rows scratch
        ts = m_ref.shape[1]

        s = pl.program_id(1)

        @pl.when(s == 0)
        def _init():
            gram_ref[...] = jnp.zeros_like(gram_ref)
            m_ref[...] = jnp.zeros_like(m_ref)        # zero padding rows once
            if use_beta:
                m_ref[0:1, :] = jnp.ones((1, ts), jnp.float32)   # constant column

        t = t_ref[...].astype(jnp.float32)            # (C, TS)
        o = o_ref[...].astype(jnp.float32)
        m_ref[off_d1:off_d1 + C, :] = t - o
        if use_f:
            f = f_ref[...].astype(jnp.float32)
            m_ref[off_d2:off_d2 + C, :] = t - f
        if use_beta:
            m_ref[off_g:off_g + C, :] = g_ref[...].astype(jnp.float32)
            xs = x_ref[...].astype(jnp.float32)       # (2, TS): x0, x1
            m_ref[1:3, :] = xs                        # x0, x1      (one 2-row store)
            m_ref[3:5, :] = xs * xs                   # x0^2, x1^2  (one 2-row store)
            m_ref[5:6, :] = xs[0:1, :] * xs[1:2, :]   # x0*x1

        # Single stacked Gram: contracts the lane (spatial) axis of both
        # operands -- same q @ k^T pattern as flash attention, MXU-native.
        M = m_ref[...]
        gram_ref[...] += lax.dot_general(
            M, M, (((1,), (1,)), ((), ())), preferred_element_type=jnp.float32)

    return kernel


def joint_loss(targets, outputs, inputs, features, growth, *, alpha=0.0, beta=0.0):
    B, C, S = targets.shape
    assert outputs.shape == (B, C, S)
    assert features.shape == (B, C, S)
    assert growth.shape == (B, C, S)
    assert inputs.shape == (B, 2, S)
    # TODO(synk): ragged spatial sizes (S not a multiple of 128) would need a
    # masked tail tile; for now require 128-aligned S.
    assert S % 128 == 0, "S must be a multiple of 128 for this tiling"

    use_beta = beta > 0
    use_alpha = alpha > 0
    use_f = use_alpha or use_beta   # (t - f) rows needed for alpha and/or beta

    # Row layout of the stacked matrix M.
    n_lib = 6 if use_beta else 0
    n_g = C if use_beta else 0
    off_g = n_lib
    off_d1 = n_lib + n_g
    off_d2 = off_d1 + C
    rows = off_d2 + (C if use_f else 0)
    Mp = max(_ceil_to(rows, 8), 8)

    # Streamed inputs (only the ones this specialization needs).
    in_arrays = [targets, outputs]
    stream_rows = [C, C]
    if use_f:
        in_arrays.append(features)
        stream_rows.append(C)
    if use_beta:
        in_arrays += [growth, inputs]
        stream_rows += [C, 2]

    # Generation-aware tile + explicit scoped-VMEM limit.
    vmem_cap = _vmem_capacity_bytes()
    budget = max(vmem_cap - (24 << 20), 16 << 20)
    TS, footprint = _pick_tile(S, stream_rows, Mp, budget)
    vmem_limit = int(max(min(vmem_cap - (8 << 20), footprint + (8 << 20)), 32 << 20))

    def spec(r):
        return pl.BlockSpec((None, r, TS), lambda b, s: (b, 0, s))

    in_specs = [spec(C), spec(C)]
    if use_f:
        in_specs.append(spec(C))
    if use_beta:
        in_specs += [spec(C), spec(2)]

    kernel = _make_gram_kernel(C, use_f, use_beta, off_g, off_d1, off_d2)

    gram_b = pl.pallas_call(
        kernel,
        out_shape=jax.ShapeDtypeStruct((B, Mp, Mp), jnp.float32),
        grid_spec=pltpu.PrefetchScalarGridSpec(
            num_scalar_prefetch=0,
            grid=(B, S // TS),
            in_specs=in_specs,
            out_specs=pl.BlockSpec((None, Mp, Mp), lambda b, s: (b, 0, 0)),
            scratch_shapes=[pltpu.VMEM((Mp, TS), jnp.float32)]),
        compiler_params=pltpu.CompilerParams(
            dimension_semantics=("parallel", "arbitrary"),
            vmem_limit_bytes=vmem_limit),
    )(*in_arrays)

    # Tiny cross-batch reduction of the per-batch partial Grams.
    gram = jnp.sum(gram_b, axis=0)          # (Mp, Mp)
    n_elem = B * C * S

    sse1 = jnp.trace(gram[off_d1:off_d1 + C, off_d1:off_d1 + C])   # ||t - o||^2
    loss = sse1 / n_elem

    if use_f:
        sse2 = jnp.trace(gram[off_d2:off_d2 + C, off_d2:off_d2 + C])  # ||t - f||^2
    if use_alpha:
        loss = loss + alpha * (sse2 / n_elem)
    if use_beta:
        A = gram[0:6, 0:6]                       # A^T A
        atb = gram[0:6, off_g:off_g + C]         # A^T growth
        atd = gram[0:6, off_d2:off_d2 + C]       # A^T (t - f)
        # TODO(synk): torch.linalg.lstsq's dense QR has no Pallas equivalent;
        # the O(B*S) Gram work runs in-kernel and the tiny 6x6 normal-equation
        # solve stays in plain JAX.  A small relative ridge guards against the
        # squared condition number of the normal equations.
        ridge = 1e-7 * (jnp.trace(A) / 6.0)
        w = jnp.linalg.solve(A + ridge * jnp.eye(6, dtype=A.dtype), atb)  # (6, C)
        # ||t - f - Lib @ w||^2 = sse2 - 2<w, A^T(t-f)> + <w, (A^T A) w>
        # TODO(synk): algebraically exact, but fp32 cancellation is possible if
        # the SINDy fit explains nearly all of (t - f).
        sse3 = sse2 - 2.0 * jnp.sum(w * atd) + jnp.sum(w * (A @ w))
        loss = loss + beta * (sse3 / n_elem)
    return loss


def joint_loss_ref(targets, outputs, inputs, features, growth, *, alpha, beta):
    """Pure-JAX reference mirroring the PyTorch module."""
    mse = lambda a, b: jnp.mean((a - b) ** 2)
    loss = mse(targets, outputs)
    if alpha > 0:
        loss = loss + alpha * mse(targets, features)
    if beta > 0:
        B, C, _ = growth.shape
        x0, x1 = inputs[:, 0], inputs[:, 1]
        lib = jnp.stack([jnp.ones_like(x0), x0, x1, x0 ** 2, x1 ** 2, x0 * x1], axis=-1)
        A = lib.reshape(-1, lib.shape[-1])
        b = jnp.moveaxis(growth, 1, -1).reshape(-1, C)
        w, *_ = jnp.linalg.lstsq(A, b)
        gp = (A @ w).reshape(B, -1, C)
        gp = jnp.moveaxis(gp, -1, 1)
        loss = loss + beta * mse(targets, features + gp)
    return loss


if __name__ == "__main__":
    key = jax.random.PRNGKey(0)
    B, C, S = 2, 2, 1024            # batch B, channels C, spatial S (128-aligned)
    ks = jax.random.split(key, 5)
    targets  = jax.random.normal(ks[0], (B, C, S), jnp.float32)
    outputs  = jax.random.normal(ks[1], (B, C, S), jnp.float32)
    inputs   = jax.random.normal(ks[2], (B, 2, S), jnp.float32)
    features = jax.random.normal(ks[3], (B, C, S), jnp.float32)
    growth   = 0.1 * jax.random.normal(ks[4], (B, C, S), jnp.float32)

    # Exercise every static specialization: full path, alpha-only, module defaults.
    for alpha, beta in ((0.5, 0.25), (0.7, 0.0), (0.0, 0.0)):
        loss_fn = jax.jit(functools.partial(joint_loss, alpha=alpha, beta=beta))
        loss = loss_fn(targets, outputs, inputs, features, growth)
        jax.block_until_ready(loss)
        ref = joint_loss_ref(targets, outputs, inputs, features, growth,
                             alpha=alpha, beta=beta)
        assert jnp.allclose(loss, ref, rtol=1e-2, atol=1e-4), \
            (alpha, beta, float(loss), float(ref))

    print("KERNEL_OK")
</pallas_src>

<mosaic_0001>
module attributes {stable_mosaic.version = 11 : i64} {
  func.func @kernel(%arg0: i32, %arg1: i32, %arg2: memref<1x2x1024xf32, #tpu.memory_space<vmem>>, %arg3: memref<1x2x1024xf32, #tpu.memory_space<vmem>>, %arg4: memref<1x2x1024xf32, #tpu.memory_space<vmem>>, %arg5: memref<1x2x1024xf32, #tpu.memory_space<vmem>>, %arg6: memref<1x2x1024xf32, #tpu.memory_space<vmem>>, %arg7: memref<1x16x16xf32, #tpu.memory_space<vmem>>, %arg8: memref<16x1024xf32, #tpu.memory_space<vmem>>) attributes {dimension_semantics = [#tpu.dimension_semantics<parallel>, #tpu.dimension_semantics<arbitrary>], iteration_bounds = array<i64: 2, 1>, scalar_prefetch = 0 : i64, scratch_operands = 1 : i64, tpu.core_type = #tpu.core_type<tc>, window_params = [{transform_indices = @transform_0, window_bounds = array<i64: 1, 2, 1024>}, {transform_indices = @transform_1, window_bounds = array<i64: 1, 2, 1024>}, {transform_indices = @transform_2, window_bounds = array<i64: 1, 2, 1024>}, {transform_indices = @transform_3, window_bounds = array<i64: 1, 2, 1024>}, {transform_indices = @transform_4, window_bounds = array<i64: 1, 2, 1024>}, {transform_indices = @transform_5, window_bounds = array<i64: 1, 16, 16>}]} {
    %c0_i32 = arith.constant 0 : i32
    %0 = arith.cmpi eq, %arg1, %c0_i32 : i32
    %1 = arith.extui %0 : i1 to i32
    %c0_i32_0 = arith.constant 0 : i32
    %2 = arith.cmpi ne, %1, %c0_i32_0 : i32
    scf.if %2 {
      %cst_29 = arith.constant 0.000000e+00 : f32
      %33 = vector.broadcast %cst_29 : f32 to vector<16x16xf32>
      %c0_30 = arith.constant 0 : index
      %c0_31 = arith.constant 0 : index
      %c0_32 = arith.constant 0 : index
      %34 = vector.load %arg7[%c0_30, %c0_31, %c0_32] : memref<1x16x16xf32, #tpu.memory_space<vmem>>, vector<1x16x16xf32>
      %35 = vector.shape_cast %34 : vector<1x16x16xf32> to vector<16x16xf32>
      %36 = vector.shape_cast %33 : vector<16x16xf32> to vector<1x16x16xf32>
      tpu.vector_store %arg7[%c0_30, %c0_31, %c0_32], %36 {strides = array<i32>} : memref<1x16x16xf32, #tpu.memory_space<vmem>>, vector<1x16x16xf32>,
      %cst_33 = arith.constant 0.000000e+00 : f32
      %37 = vector.broadcast %cst_33 : f32 to vector<16x1024xf32>
      %c0_34 = arith.constant 0 : index
      %c0_35 = arith.constant 0 : index
      %38 = vector.load %arg8[%c0_34, %c0_35] : memref<16x1024xf32, #tpu.memory_space<vmem>>, vector<16x1024xf32>
      tpu.vector_store %arg8[%c0_34, %c0_35], %37 {strides = array<i32>} : memref<16x1024xf32, #tpu.memory_space<vmem>>, vector<16x1024xf32>,
      %cst_36 = arith.constant 1.000000e+00 : f32
      %39 = vector.broadcast %cst_36 : f32 to vector<1x1024xf32>
      %c0_37 = arith.constant 0 : index
      %c0_38 = arith.constant 0 : index
      %40 = vector.load %arg8[%c0_37, %c0_38] : memref<16x1024xf32, #tpu.memory_space<vmem>>, vector<1x1024xf32>
      tpu.vector_store %arg8[%c0_37, %c0_38], %39 {strides = array<i32>} : memref<16x1024xf32, #tpu.memory_space<vmem>>, vector<1x1024xf32>,
    } else {
    }
    %c0 = arith.constant 0 : index
    %c0_1 = arith.constant 0 : index
    %c0_2 = arith.constant 0 : index
    %3 = vector.load %arg2[%c0, %c0_1, %c0_2] : memref<1x2x1024xf32, #tpu.memory_space<vmem>>, vector<1x2x1024xf32>
    %4 = vector.shape_cast %3 : vector<1x2x1024xf32> to vector<2x1024xf32>
    %c0_3 = arith.constant 0 : index
    %c0_4 = arith.constant 0 : index
    %c0_5 = arith.constant 0 : index
    %5 = vector.load %arg3[%c0_3, %c0_4, %c0_5] : memref<1x2x1024xf32, #tpu.memory_space<vmem>>, vector<1x2x1024xf32>
    %6 = vector.shape_cast %5 : vector<1x2x1024xf32> to vector<2x1024xf32>
    %7 = arith.subf %4, %6 : vector<2x1024xf32>
    %c8 = arith.constant 8 : index
    %c0_6 = arith.constant 0 : index
    %8 = vector.load %arg8[%c8, %c0_6] : memref<16x1024xf32, #tpu.memory_space<vmem>>, vector<2x1024xf32>
    tpu.vector_store %arg8[%c8, %c0_6], %7 {strides = array<i32>} : memref<16x1024xf32, #tpu.memory_space<vmem>>, vector<2x1024xf32>,
    %c0_7 = arith.constant 0 : index
    %c0_8 = arith.constant 0 : index
    %c0_9 = arith.constant 0 : index
    %9 = vector.load %arg4[%c0_7, %c0_8, %c0_9] : memref<1x2x1024xf32, #tpu.memory_space<vmem>>, vector<1x2x1024xf32>
    %10 = vector.shape_cast %9 : vector<1x2x1024xf32> to vector<2x1024xf32>
    %11 = arith.subf %4, %10 : vector<2x1024xf32>
    %c10 = arith.constant 10 : index
    %c0_10 = arith.constant 0 : index
    %12 = vector.load %arg8[%c10, %c0_10] : memref<16x1024xf32, #tpu.memory_space<vmem>>, vector<2x1024xf32>
    tpu.vector_store %arg8[%c10, %c0_10], %11 {strides = array<i32>} : memref<16x1024xf32, #tpu.memory_space<vmem>>, vector<2x1024xf32>,
    %c0_11 = arith.constant 0 : index
    %c0_12 = arith.constant 0 : index
    %c0_13 = arith.constant 0 : index
    %13 = vector.load %arg5[%c0_11, %c0_12, %c0_13] : memref<1x2x1024xf32, #tpu.memory_space<vmem>>, vector<1x2x1024xf32>
    %14 = vector.shape_cast %13 : vector<1x2x1024xf32> to vector<2x1024xf32>
    %c6 = arith.constant 6 : index
    %c0_14 = arith.constant 0 : index
    %15 = vector.load %arg8[%c6, %c0_14] : memref<16x1024xf32, #tpu.memory_space<vmem>>, vector<2x1024xf32>
    tpu.vector_store %arg8[%c6, %c0_14], %14 {strides = array<i32>} : memref<16x1024xf32, #tpu.memory_space<vmem>>, vector<2x1024xf32>,
    %c0_15 = arith.constant 0 : index
    %c0_16 = arith.constant 0 : index
    %c0_17 = arith.constant 0 : index
    %16 = vector.load %arg6[%c0_15, %c0_16, %c0_17] : memref<1x2x1024xf32, #tpu.memory_space<vmem>>, vector<1x2x1024xf32>
    %17 = vector.shape_cast %16 : vector<1x2x1024xf32> to vector<2x1024xf32>
    %c1 = arith.constant 1 : index
    %c0_18 = arith.constant 0 : index
    %18 = vector.load %arg8[%c1, %c0_18] : memref<16x1024xf32, #tpu.memory_space<vmem>>, vector<2x1024xf32>
    tpu.vector_store %arg8[%c1, %c0_18], %17 {strides = array<i32>} : memref<16x1024xf32, #tpu.memory_space<vmem>>, vector<2x1024xf32>,
    %19 = arith.mulf %17, %17 : vector<2x1024xf32>
    %c3 = arith.constant 3 : index
    %c0_19 = arith.constant 0 : index
    %20 = vector.load %arg8[%c3, %c0_19] : memref<16x1024xf32, #tpu.memory_space<vmem>>, vector<2x1024xf32>
    tpu.vector_store %arg8[%c3, %c0_19], %19 {strides = array<i32>} : memref<16x1024xf32, #tpu.memory_space<vmem>>, vector<2x1024xf32>,
    %21 = vector.extract_strided_slice %17 {offsets = [0, 0], sizes = [1, 1024], strides = [1, 1]} : vector<2x1024xf32> to vector<1x1024xf32>
    %22 = vector.extract_strided_slice %17 {offsets = [1, 0], sizes = [1, 1024], strides = [1, 1]} : vector<2x1024xf32> to vector<1x1024xf32>
    %23 = arith.mulf %21, %22 : vector<1x1024xf32>
    %c5 = arith.constant 5 : index
    %c0_20 = arith.constant 0 : index
    %24 = vector.load %arg8[%c5, %c0_20] : memref<16x1024xf32, #tpu.memory_space<vmem>>, vector<1x1024xf32>
    tpu.vector_store %arg8[%c5, %c0_20], %23 {strides = array<i32>} : memref<16x1024xf32, #tpu.memory_space<vmem>>, vector<1x1024xf32>,
    %c0_21 = arith.constant 0 : index
    %c0_22 = arith.constant 0 : index
    %25 = vector.load %arg8[%c0_21, %c0_22] : memref<16x1024xf32, #tpu.memory_space<vmem>>, vector<16x1024xf32>
    %c0_23 = arith.constant 0 : index
    %c0_24 = arith.constant 0 : index
    %c0_25 = arith.constant 0 : index
    %26 = vector.load %arg7[%c0_23, %c0_24, %c0_25] : memref<1x16x16xf32, #tpu.memory_space<vmem>>, vector<1x16x16xf32>
    %27 = vector.shape_cast %26 : vector<1x16x16xf32> to vector<16x16xf32>
    %cst = arith.constant dense<0.000000e+00> : vector<16x16xf32>
    %28 = tpu.matmul %25, %25, %cst {dimension_numbers = #tpu.dot_dimension_numbers<[1], [1], [0], [0], [0, 0, 1, 0], [], []>} : vector<16x1024xf32>, vector<16x1024xf32>, vector<16x16xf32> -> vector<16x16xf32>
    %29 = arith.addf %27, %28 : vector<16x16xf32>
    %c0_26 = arith.constant 0 : index
    %c0_27 = arith.constant 0 : index
    %c0_28 = arith.constant 0 : index
    %30 = vector.load %arg7[%c0_26, %c0_27, %c0_28] : memref<1x16x16xf32, #tpu.memory_space<vmem>>, vector<1x16x16xf32>
    %31 = vector.shape_cast %30 : vector<1x16x16xf32> to vector<16x16xf32>
    %32 = vector.shape_cast %29 : vector<16x16xf32> to vector<1x16x16xf32>
    tpu.vector_store %arg7[%c0_26, %c0_27, %c0_28], %32 {strides = array<i32>} : memref<1x16x16xf32, #tpu.memory_space<vmem>>, vector<1x16x16xf32>,
    return
  }
  func.func @transform_0(%arg0: i32, %arg1: i32) -> (i32, i32, i32) {
    %c0_i32 = arith.constant 0 : i32
    %c0_i32_0 = arith.constant 0 : i32
    return %arg0, %c0_i32, %arg1 : i32, i32, i32
  }
  func.func @transform_1(%arg0: i32, %arg1: i32) -> (i32, i32, i32) {
    %c0_i32 = arith.constant 0 : i32
    %c0_i32_0 = arith.constant 0 : i32
    return %arg0, %c0_i32, %arg1 : i32, i32, i32
  }
  func.func @transform_2(%arg0: i32, %arg1: i32) -> (i32, i32, i32) {
    %c0_i32 = arith.constant 0 : i32
    %c0_i32_0 = arith.constant 0 : i32
    return %arg0, %c0_i32, %arg1 : i32, i32, i32
  }
  func.func @transform_3(%arg0: i32, %arg1: i32) -> (i32, i32, i32) {
    %c0_i32 = arith.constant 0 : i32
    %c0_i32_0 = arith.constant 0 : i32
    return %arg0, %c0_i32, %arg1 : i32, i32, i32
  }
  func.func @transform_4(%arg0: i32, %arg1: i32) -> (i32, i32, i32) {
    %c0_i32 = arith.constant 0 : i32
    %c0_i32_0 = arith.constant 0 : i32
    return %arg0, %c0_i32, %arg1 : i32, i32, i32
  }
  func.func @transform_5(%arg0: i32, %arg1: i32) -> (i32, i32, i32) {
    %c0_i32 = arith.constant 0 : i32
    %c0_i32_0 = arith.constant 0 : i32
    %c0_i32_1 = arith.constant 0 : i32
    return %arg0, %c0_i32, %c0_i32_0 : i32, i32, i32
  }
}

</mosaic_0001>

<bundles_post_ra>
// kernel: custom-call.8
= control target key start
LH: loop header
LB: loop body
LE: loop exit
PB: predicated region body
PF: predicated region fallthrough
CT: control target
= control target key end

     0   :  { %5 = vsyncpa [#allocation4], 0  ;;  %s687_s12 = smov [#allocation0]   ;;  %s780_s0 = inlined_call_operand.vmem [shape: f32[6,6], index: 0, kind: input, shape index: {}]   ;;  %s781_s1 = inlined_call_operand.vmem [shape: f32[6,6], index: 1, kind: output, shape index: {0}]   ;;  %s782_s2 = inlined_call_operand.hbm [shape: s32[6], index: 2, kind: output, shape index: {1}]   ;;  %s783_s3 = inlined_call_operand.vmem [shape: s32[6], index: 3, kind: output, shape index: {2}]  }
   0x1   :  { %s691_s15 = smov %s780_s0  }
   0x2 LB: > { %v53_v0 = vld [vmem:[%s693_s15] sm:$0xff]  ;;  %s55_s15 = scalar_lea.vmem %s693_s15, 8   ;;  %s693_s15 = sphi %s691_s15, %s55_s15   ;;  %s689_s12 = sphi %s687_s12, %s56_s12  }
   0x3   : > { %54 = vst [vmem:[%s689_s12] sm:$0xff] %v53_v0  ;;  %s56_s12 = scalar_lea.vmem %s689_s12, 8   ;;  %p50_p0 = scmp.gt.s32.totalorder %s55_s15, %s780_s0 }
   0x4   :  { %v72_v2 = vlaneseq (%p50_p0)  ;;  %v707_v3 = vmov (%p50_p0), 0   ;;  %s739_s18 = smov (%p50_p0), 0  }
   0x5   :  { %52 = sbr.rel (!%p50_p0) target bundleno = 2 (0x2), region = 152  ;;  %71 = vst [vmem:[#allocation2] sm:$0x1] (%p50_p0), %v707_v3 }
   0x6   :  { %v736_v4 = vshrl.u32 (%p50_p0), %v72_v2, 7 }
   0x8   :  { %76 = vst [vmem:[#allocation7] sm:$0xff] (%p50_p0), %v736_v4 }
   0xa   :  { %v69_v1 = vld [vmem:[#allocation0] sm:$0xff] }
   0xb   :  { %70 = vst [vmem:[#allocation1] sm:$0xff] %v69_v1 }
   0xc LB: > { %vm92_vm0 = vcmp.lt.s32.totalorder %v736_v4, 6  ;;  %v746_v7 = vstv %s697_s18  ;;  %s133_s0 = ssub.s32 128, %s697_s18  ;;  %v139_v37 = vand.u32 127, %v72_v2  ;;  %v142_v39 = vld [vmem:[#allocation2] ss:$0 sm:$0xff]  ;;  %s145_s19 = scalar_lea.vmem [#allocation1], %s697_s18  ;;  %s697_s18 = sphi %s739_s18, %s82_s18  }
   0xd   : > { %vm91_vm1 = vcmp.ge.s32.totalorder %v736_v4, %v746_v7  ;;  %s151_s21 = scalar_lea.vmem [#allocation7], %s697_s18  ;;  %vm171_vm15 = vcmp.gt.s32.totalorder %v736_v4, %v746_v7  ;;  %s82_s18 = sadd.s32 1, %s697_s18  }
   0xe   : > { %vm93_vm3 = vmand %vm91_vm1, %vm92_vm0  ;;  %vm163_vm12 = vcmp.gt.s32.totalorder %v139_v37, %v746_v7  ;;  %vm140_vm13 = vcmp.eq.s32.totalorder %v139_v37, %v746_v7  ;;  %p79_p1 = scmp.ge.s32.totalorder %s82_s18, 6  }
   0xf   : > { %v153_v41 = vld [vmem:[%s151_s21] ss:$0 sm:$0xff]  ;;  %vm175_vm1 = vmand %vm171_vm15, %vm140_vm13  ;;  %s699_s26 = smov (%p79_p1), %s781_s1   ;;  %s703_s27 = smov (%p79_p1), [#allocation1]  }
  0x12   : > { %v87_v5 = vld [vmem:[#allocation1] sm:$0xff]  ;;  %v147_v40 = vld [vmem:[%s145_s19] ss:$0 sm:$0xff] }
  0x13   : > { %v88_v6 = vand.u32 2147483647, %v87_v5 }
  0x15   : > { %vm470_vm2 = vcmp.gt.f32.partialorder %v88_v6, -inf }
  0x16   : > { %vm95_vm4 = vmand %vm93_vm3, %vm470_vm2 }
  0x17   : > { %v96_v8 = vsel %vm95_vm4, %v736_v4, %v746_v7  ;;  %v97_v9 = vsel %vm95_vm4, %v88_v6, -inf }
  0x18   : > { %v98_v10 = vrot.slane %v97_v9, 1  ;;  %v99_v11 = vrot.slane %v96_v8, 1 }
  0x1a   : > { %vm100_vm5 = vcmp.ge.f32.partialorder %v98_v10, %v97_v9  ;;  %v103_v12 = vrot.slane %v98_v10, 1  ;;  %v104_v13 = vrot.slane %v99_v11, 1 }
  0x1b   : > { %v101_v14 = vsel %vm100_vm5, %v98_v10, %v97_v9  ;;  %v102_v15 = vsel %vm100_vm5, %v99_v11, %v96_v8 }
  0x1c   : > { %vm105_vm6 = vcmp.ge.f32.partialorder %v103_v12, %v101_v14  ;;  %v108_v16 = vrot.slane %v103_v12, 1  ;;  %v109_v17 = vrot.slane %v104_v13, 1 }
  0x1d   : > { %v106_v18 = vsel %vm105_vm6, %v103_v12, %v101_v14  ;;  %v107_v19 = vsel %vm105_vm6, %v104_v13, %v102_v15 }
  0x1e   : > { %vm110_vm7 = vcmp.ge.f32.partialorder %v108_v16, %v106_v18  ;;  %v113_v20 = vrot.slane %v108_v16, 1  ;;  %v114_v21 = vrot.slane %v109_v17, 1 }
  0x1f   : > { %v111_v22 = vsel %vm110_vm7, %v108_v16, %v106_v18  ;;  %v112_v23 = vsel %vm110_vm7, %v109_v17, %v107_v19 }
  0x20   : > { %vm115_vm8 = vcmp.ge.f32.partialorder %v113_v20, %v111_v22  ;;  %v118_v24 = vrot.slane %v113_v20, 1  ;;  %v119_v25 = vrot.slane %v114_v21, 1 }
  0x21   : > { %v116_v26 = vsel %vm115_vm8, %v113_v20, %v111_v22  ;;  %v117_v27 = vsel %vm115_vm8, %v114_v21, %v112_v23 }
  0x22   : > { %vm120_vm9 = vcmp.ge.f32.partialorder %v118_v24, %v116_v26  ;;  %v123_v28 = vrot.slane %v118_v24, 1  ;;  %v124_v29 = vrot.slane %v119_v25, 1 }
  0x23   : > { %v121_v30 = vsel %vm120_vm9, %v118_v24, %v116_v26  ;;  %v122_v31 = vsel %vm120_vm9, %v119_v25, %v117_v27 }
  0x24   : > { %vm125_vm10 = vcmp.ge.f32.partialorder %v123_v28, %v121_v30  ;;  %v128_v32 = vrot.slane %v123_v28, 1  ;;  %v129_v33 = vrot.slane %v124_v29, 1 }
  0x25   : > { %v126_v34 = vsel %vm125_vm10, %v123_v28, %v121_v30  ;;  %v127_v35 = vsel %vm125_vm10, %v124_v29, %v122_v31 }
  0x26   : > { %vm130_vm11 = vcmp.ge.f32.partialorder %v128_v32, %v126_v34 }
  0x27   : > { %v132_v36 = vsel %vm130_vm11, %v129_v33, %v127_v35 }
  0x28   : > { %134 = vrot.lane.b32.xlu0 %v132_v36, %s133_s0 }
  0x9a   : > { %v135_v38 = vpop.permute.xlu0 %134 }
  0x9b   : > { %478 = vpush %v135_v38 }
  0xcc   : > { %s479_s20 = spop %478 }
  0xcd   : > { %v141_v42 = vstv %s479_s20  ;;  %s146_s22 = scalar_lea.vmem [#allocation1], %s479_s20  ;;  %s152_s23 = scalar_lea.vmem [#allocation7], %s479_s20 }
  0xce   : > { %v148_v43 = vld [vmem:[%s146_s22] ss:$0 sm:$0xff]  ;;  %v143_v45 = vsel %vm140_vm13, %v141_v42, %v142_v39 }
  0xcf   : > { %v154_v44 = vld [vmem:[%s152_s23] ss:$0 sm:$0xff]  ;;  %149 = vst [vmem:[%s146_s22] sm:$0x1] %v147_v40  ;;  %vm157_vm14 = vcmp.ne.f32.partialorder %v148_v43, 0.0  ;;  %144 = vst [vmem:[#allocation2] sm:$0x1] %v143_v45 }
  0xd0   : > { %155 = vst [vmem:[%s152_s23] sm:$0x1] %v153_v41  ;;  %150 = vst [vmem:[%s145_s19] sm:$0x1] %v148_v43  ;;  %v164_v52 = vsel %vm163_vm12, %v148_v43, 0.0 }
  0xd1   : > { %156 = vst [vmem:[%s151_s21] sm:$0x1] %v154_v44  ;;  %vm158_vm0 = vmand %vm140_vm13, %vm157_vm14 }
  0xd2   : > { %v159_v46 = vsel %vm158_vm0, %v148_v43, 1.0 }
  0xd3   : > { %v172_v47 = vsel %vm171_vm15, %v159_v46, 1.0 }
  0xd4   : > { %603 = vrcp.f32 %v172_v47 }
  0xd6   :  { %v235_v57 = vld [vmem:[#allocation2] sm:$0x1] (%p79_p1) }
  0xd7   : > { %v168_v49 = vld [vmem:[#allocation1] sm:$0xff]  ;;  %238 = vst [vmem:[#allocation3] sm:$0x1] (%p79_p1), %v235_v57 }
  0xd8   :  { %v182_v56 = vld [vmem:[#allocation7] sm:$0xff] (%p79_p1) }
  0xe1   : > { %v604_v48 = vpop.eup %603 }
  0xe2   : > { %v174_v50 = vmul.f32 %v604_v48, %v168_v49 }
  0xe4   : > { %v176_v51 = vsel %vm175_vm1, %v174_v50, 0.0 }
  0xe5   : > { %177 = vadd.xlane.f32.xlu0 %v176_v51 }
 0x112   :  { %198 = vxpose.xlu0.b32.start.end [1/1] (short) (narrow) (%p79_p1), %v182_v56, 8 }
 0x16e   : > { %v178_v53 = vpop.xlane.xlu0 %177 }
 0x16f   : > { %v179_v54 = vmul.f32 %v178_v53, %v164_v52  ;;  %81 = sbr.rel (!%p79_p1) target bundleno = 12 (0xc), region = 163 }
 0x171   : > { %v180_v55 = vsub.f32 %v174_v50, %v179_v54 }
 0x173   : > { %181 = vst [vmem:[#allocation1] sm:$0xff] %v180_v55 }
 0x18e   :  { %v214_v58 = vpop.trf.xlu0 }
 0x18f   :  { %230 = vst [vmem:[#allocation5] sm:$0x1] %v214_v58 }
 0x196   :  { %v243_v59 = vld [vmem:[#allocation5] sm:$0x1] }
 0x197   :  { %246 = vst [vmem:[#allocation6] sm:$0x1] %v243_v59 }
 0x198 LB: > { %v294_v60 = vld [vmem:[%s705_s27] sm:$0xff]  ;;  %s296_s27 = scalar_lea.vmem %s705_s27, 8   ;;  %s705_s27 = sphi %s703_s27, %s296_s27   ;;  %s701_s26 = sphi %s699_s26, %s297_s26  }
 0x199   : > { %295 = vst [vmem:[%s701_s26] sm:$0xff] %v294_v60  ;;  %s297_s26 = scalar_lea.vmem %s701_s26, 8   ;;  %p291_p2 = scmp.gt.s32.totalorder %s296_s27, [#allocation1] }
 0x19a   :  { %s708_s28 = smov (%p291_p2), [#allocation3]  }
 0x19b   :  { %293 = sbr.rel (!%p291_p2) target bundleno = 408 (0x198), region = 185  ;;  %s315_s29 = sshll.u32 (%p291_p2), %s708_s28, 4  ;;  %s316_s29 = int_to_ptr.vmem [resolvable:$true] %s315_s29 }
 0x19c   :  { %s605_s1 = scalar_lea.vmem (%p291_p2), %s316_s29, 16  ;;  %s609_s5 = scalar_lea.vmem (%p291_p2), %s316_s29, 32 }
 0x19d   :  { %p606_p3 = scmp.ne.s32.totalorder (%p291_p2), %s316_s29, %s605_s1  ;;  %p610_p4 = scmp.lt.s32.totalorder (%p291_p2), %s316_s29, %s316_s29 }
 0x19e   :  { %v382_v61 = vld [vmem:[#allocation6] sm:$0x1] (%p291_p2)  ;;  %p611_p5 = scmp.lt.s32.totalorder (%p291_p2), %s609_s5, %s605_s1 }
 0x19f   :  { %383 = vst [vmem:[%s783_s3] sm:$0x1] (%p291_p2), %v382_v61 }
 0x1a0   :  { %p612_p6 = por %p611_p5, %p610_p4 }
 0x1a2   :  { %p613_p7 = pnand %p612_p6, %p606_p3 }
 0x1a4   :  { %616 = shalt.err (!%p613_p7)
}
 0x1a5   :  { %318 = dma.vmem_to_hbm [thread:$0]  %s316_s29, 16, %s782_s2, [#allocation4]  }
 0x1a6   :  { %685 = dma.done.wait [#allocation4], 16  }
 0x1a7   :  { %686 = vsyncadd [#allocation4], 4294967280 }
 0x1a8   :  { %389 = vsyncpa [#allocation4], 1 }

// kernel: custom-call.10
= control target key start
LH: loop header
LB: loop body
LE: loop exit
PB: predicated region body
PF: predicated region fallthrough
CT: control target
= control target key end

     0   :  { %v35_v0 = vlaneseq  ;;  %v162_v9 = vmov -1.0   ;;  %s179_s0 = inlined_call_operand.vmem [shape: f32[1,6,6], index: 0, kind: input, shape index: {}]   ;;  %s180_s1 = inlined_call_operand.vmem [shape: f32[1,6,6], index: 1, kind: output, shape index: {}]  }
   0x1   :  { %v30_v1 = vld [vmem:[%s179_s0] sm:$0xff] }
   0x2   :  { %v36_v2 = vand.u32 127, %v35_v0  ;;  %v39_v3 = vshrl.u32 %v35_v0, 7 }
   0x4   :  { %vm37_vm0 = vcmp.lt.s32.totalorder %v36_v2, 6  ;;  %vm41_vm1 = vcmp.eq.s32.totalorder %v39_v3, %v36_v2  ;;  %vm46_vm2 = vcmp.ge.s32.totalorder %v39_v3, %v36_v2  ;;  %vm60_vm4 = vcmp.eq.s32.totalorder %v36_v2, 0 }
   0x5   :  { %v43_v4 = vsel %vm41_vm1, %v30_v1, 0.0  ;;  %vm47_vm3 = vmand %vm46_vm2, %vm37_vm0  ;;  %vm57_vm5 = vcmp.eq.s32.totalorder %v36_v2, %v39_v3  ;;  %v61_v10 = vsel %vm60_vm4, 1.0, %v162_v9  ;;  %vm68_vm6 = vcmp.eq.s32.totalorder %v36_v2, 1 }
   0x6   :  { %v48_v5 = vsel %vm47_vm3, %v30_v1, 0.0  ;;  %44 = vadd.xlane.f32.xlu0 %v43_v4  ;;  %v62_v11 = vsel %vm57_vm5, %v61_v10, 0.0  ;;  %vm78_vm7 = vcmp.eq.s32.totalorder %v36_v2, 2  ;;  %vm88_vm8 = vcmp.eq.s32.totalorder %v36_v2, 3 }
   0x7   :  { %vm98_vm9 = vcmp.eq.s32.totalorder %v36_v2, 4  ;;  %vm108_vm10 = vcmp.eq.s32.totalorder %v36_v2, 5 }
  0x8f   :  { %v45_v6 = vpop.xlane.xlu0 %44 }
  0x90   :  { %160 = vrcp.f32 %v45_v6  ;;  %vm115_vm11 = vweird.f32 %v45_v6 }
  0x9d   :  { %v161_v7 = vpop.eup %160 }
  0x9e   :  { %v50_v8 = vmul.f32 %v161_v7, %v48_v5 }
  0xa0   :  { %51 = vst [vmem:[#allocation2] sm:$0xff] %v50_v8 }
  0xa7   :  { %v64_v12 = vld [vmem:[#allocation2 + $0x1] ss:$0 sm:$0xff]  ;;  %v74_v15 = vld [vmem:[#allocation2 + $0x2] ss:$0 sm:$0xff]  ;;  %v84_v20 = vld [vmem:[#allocation2 + $0x3] ss:$0 sm:$0xff] }
  0xa8   :  { %v65_v13 = vxor.u32 2147483648, %v64_v12  ;;  %v75_v17 = vxor.u32 2147483648, %v74_v15  ;;  %v85_v22 = vxor.u32 2147483648, %v84_v20  ;;  %v94_v25 = vld [vmem:[#allocation2 + $0x4] ss:$0 sm:$0xff] }
  0xa9   :  { %v95_v27 = vxor.u32 2147483648, %v94_v25  ;;  %v104_v30 = vld [vmem:[#allocation2 + $0x5] ss:$0 sm:$0xff] }
  0xaa   :  { %v69_v14 = vmul.f32 %v65_v13, %v62_v11  ;;  %v105_v32 = vxor.u32 2147483648, %v104_v30 }
  0xac   :  { %70 = vadd.xlane.f32.xlu0 %v69_v14 }
 0x135   :  { %v71_v16 = vpop.xlane.xlu0 %70 }
 0x136   :  { %v72_v18 = vsel %vm68_vm6, %v71_v16, %v62_v11 }
 0x137   :  { %v79_v19 = vmul.f32 %v75_v17, %v72_v18 }
 0x139   :  { %80 = vadd.xlane.f32.xlu1 %v79_v19 }
 0x1c2   :  { %v81_v21 = vpop.xlane.xlu1 %80 }
 0x1c3   :  { %v82_v23 = vsel %vm78_vm7, %v81_v21, %v72_v18 }
 0x1c4   :  { %v89_v24 = vmul.f32 %v85_v22, %v82_v23 }
 0x1c6   :  { %90 = vadd.xlane.f32.xlu1 %v89_v24 }
 0x24f   :  { %v91_v26 = vpop.xlane.xlu1 %90 }
 0x250   :  { %v92_v28 = vsel %vm88_vm8, %v91_v26, %v82_v23 }
 0x251   :  { %v99_v29 = vmul.f32 %v95_v27, %v92_v28 }
 0x253   :  { %100 = vadd.xlane.f32.xlu0 %v99_v29 }
 0x2dc   :  { %v101_v31 = vpop.xlane.xlu0 %100 }
 0x2dd   :  { %v102_v33 = vsel %vm98_vm9, %v101_v31, %v92_v28 }
 0x2de   :  { %v109_v34 = vmul.f32 %v105_v32, %v102_v33 }
 0x2e0   :  { %110 = vadd.xlane.f32.xlu1 %v109_v34 }
 0x369   :  { %v111_v35 = vpop.xlane.xlu1 %110 }
 0x36a   :  { %v112_v36 = vsel %vm108_vm10, %v111_v35, %v102_v33 }
 0x36b   :  { %v114_v37 = vmul.f32 %v161_v7, %v112_v36 }
 0x36d   :  { %v116_v38 = vsel %vm115_vm11, %v112_v36, %v114_v37 }
 0x36e   :  { %147 = vst [vmem:[%s180_s1] sm:$0xff] %v116_v38 }

// kernel: custom-call.9
= control target key start
LH: loop header
LB: loop body
LE: loop exit
PB: predicated region body
PF: predicated region fallthrough
CT: control target
= control target key end

     0   :  { %v35_v0 = vlaneseq  ;;  %v161_v9 = vmov -1.0   ;;  %s178_s0 = inlined_call_operand.vmem [shape: f32[1,6,6], index: 0, kind: input, shape index: {}]   ;;  %s179_s1 = inlined_call_operand.vmem [shape: f32[1,6,6], index: 1, kind: output, shape index: {}]  }
   0x1   :  { %v30_v1 = vld [vmem:[%s178_s0] sm:$0xff] }
   0x2   :  { %v36_v2 = vand.u32 127, %v35_v0  ;;  %v39_v3 = vshrl.u32 %v35_v0, 7 }
   0x4   :  { %vm37_vm0 = vcmp.lt.s32.totalorder %v36_v2, 6  ;;  %vm41_vm1 = vcmp.eq.s32.totalorder %v39_v3, %v36_v2  ;;  %vm46_vm2 = vcmp.le.s32.totalorder %v39_v3, %v36_v2  ;;  %vm60_vm4 = vcmp.eq.s32.totalorder %v36_v2, 5 }
   0x5   :  { %v43_v4 = vsel %vm41_vm1, %v30_v1, 0.0  ;;  %vm47_vm3 = vmand %vm46_vm2, %vm37_vm0  ;;  %vm57_vm5 = vcmp.eq.s32.totalorder %v36_v2, %v39_v3  ;;  %v61_v10 = vsel %vm60_vm4, 1.0, %v161_v9  ;;  %vm68_vm6 = vcmp.eq.s32.totalorder %v36_v2, 4 }
   0x6   :  { %v48_v5 = vsel %vm47_vm3, %v30_v1, 0.0  ;;  %44 = vadd.xlane.f32.xlu0 %v43_v4  ;;  %v62_v11 = vsel %vm57_vm5, %v61_v10, 0.0  ;;  %vm78_vm7 = vcmp.eq.s32.totalorder %v36_v2, 3  ;;  %vm88_vm8 = vcmp.eq.s32.totalorder %v36_v2, 2 }
   0x7   :  { %vm98_vm9 = vcmp.eq.s32.totalorder %v36_v2, 1  ;;  %vm107_vm10 = vcmp.eq.s32.totalorder %v36_v2, 0 }
  0x8f   :  { %v45_v6 = vpop.xlane.xlu0 %44 }
  0x90   :  { %159 = vrcp.f32 %v45_v6  ;;  %vm114_vm11 = vweird.f32 %v45_v6 }
  0x9d   :  { %v160_v7 = vpop.eup %159 }
  0x9e   :  { %v50_v8 = vmul.f32 %v160_v7, %v48_v5 }
  0xa0   :  { %51 = vst [vmem:[#allocation2] sm:$0xff] %v50_v8 }
  0xa7   :  { %v64_v12 = vld [vmem:[#allocation2 + $0x4] ss:$0 sm:$0xff]  ;;  %v74_v15 = vld [vmem:[#allocation2 + $0x3] ss:$0 sm:$0xff]  ;;  %v84_v20 = vld [vmem:[#allocation2 + $0x2] ss:$0 sm:$0xff] }
  0xa8   :  { %v65_v13 = vxor.u32 2147483648, %v64_v12  ;;  %v75_v17 = vxor.u32 2147483648, %v74_v15  ;;  %v85_v22 = vxor.u32 2147483648, %v84_v20  ;;  %v94_v25 = vld [vmem:[#allocation2 + $0x1] ss:$0 sm:$0xff] }
  0xa9   :  { %v95_v27 = vxor.u32 2147483648, %v94_v25  ;;  %v103_v30 = vld [vmem:[#allocation2] ss:$0 sm:$0xff] }
  0xaa   :  { %v69_v14 = vmul.f32 %v65_v13, %v62_v11  ;;  %v104_v32 = vxor.u32 2147483648, %v103_v30 }
  0xac   :  { %70 = vadd.xlane.f32.xlu0 %v69_v14 }
 0x135   :  { %v71_v16 = vpop.xlane.xlu0 %70 }
 0x136   :  { %v72_v18 = vsel %vm68_vm6, %v71_v16, %v62_v11 }
 0x137   :  { %v79_v19 = vmul.f32 %v75_v17, %v72_v18 }
 0x139   :  { %80 = vadd.xlane.f32.xlu1 %v79_v19 }
 0x1c2   :  { %v81_v21 = vpop.xlane.xlu1 %80 }
 0x1c3   :  { %v82_v23 = vsel %vm78_vm7, %v81_v21, %v72_v18 }
 0x1c4   :  { %v89_v24 = vmul.f32 %v85_v22, %v82_v23 }
 0x1c6   :  { %90 = vadd.xlane.f32.xlu1 %v89_v24 }
 0x24f   :  { %v91_v26 = vpop.xlane.xlu1 %90 }
 0x250   :  { %v92_v28 = vsel %vm88_vm8, %v91_v26, %v82_v23 }
 0x251   :  { %v99_v29 = vmul.f32 %v95_v27, %v92_v28 }
 0x253   :  { %100 = vadd.xlane.f32.xlu0 %v99_v29 }
 0x2dc   :  { %v101_v31 = vpop.xlane.xlu0 %100 }
 0x2dd   :  { %v102_v33 = vsel %vm98_vm9, %v101_v31, %v92_v28 }
 0x2de   :  { %v108_v34 = vmul.f32 %v104_v32, %v102_v33 }
 0x2e0   :  { %109 = vadd.xlane.f32.xlu1 %v108_v34 }
 0x369   :  { %v110_v35 = vpop.xlane.xlu1 %109 }
 0x36a   :  { %v111_v36 = vsel %vm107_vm10, %v110_v35, %v102_v33 }
 0x36b   :  { %v113_v37 = vmul.f32 %v160_v7, %v111_v36 }
 0x36d   :  { %v115_v38 = vsel %vm114_vm11, %v111_v36, %v113_v37 }
 0x36e   :  { %146 = vst [vmem:[%s179_s1] sm:$0xff] %v115_v38 }

// kernel: joint_loss.1
= control target key start
LH: loop header
LB: loop body
LE: loop exit
PB: predicated region body
PF: predicated region fallthrough
CT: control target
= control target key end

     0   :  { %s1923_s0 = inlined_call_operand.hbm [shape: f32[2,2,1024], index: 0, kind: input, shape index: {}]   ;;  %s1924_s1 = inlined_call_operand.hbm [shape: f32[2,2,1024], index: 1, kind: input, shape index: {}]   ;;  %s1925_s2 = inlined_call_operand.hbm [shape: f32[2,2,1024], index: 2, kind: input, shape index: {}]   ;;  %s1926_s3 = inlined_call_operand.hbm [shape: f32[2,2,1024], index: 3, kind: input, shape index: {}]   ;;  %s1927_s4 = inlined_call_operand.hbm [shape: f32[2,2,1024], index: 4, kind: input, shape index: {}]   ;;  %s1928_s5 = inlined_call_operand.vmem [shape: f32[2,16,16], index: 5, kind: output, shape index: {}]  }
   0x1   :  { %1933 = sst [smem:[#allocation16_spill]] %s1924_s1 }
   0x2   :  { %1934 = sst [smem:[#allocation17_spill]] %s1926_s3 }
   0x3   :  { %10 = vsyncpa [#allocation4], 0 }
   0x4   :  { %12 = vsyncpa [#allocation4 + $0x1], 0 }
   0x5   :  { %13 = vsyncpa [#allocation6], 0 }
   0x6   :  { %15 = vsyncpa [#allocation6 + $0x1], 0 }
   0x7   :  { %16 = vsyncpa [#allocation9], 0 }
   0x8   :  { %18 = vsyncpa [#allocation9 + $0x1], 0  ;;  %s1640_s18 = smov 0   ;;  %s1642_s19 = smov 0  }
   0x9   :  { %s1644_s20 = smov 0   ;;  %s1646_s21 = smov 0  }
   0xa   :  { %s1648_s22 = smov 0   ;;  %s1650_s23 = smov 0  }
   0xb LB: > { %1935 = sst [smem:[#allocation14_spill]] %s1595_s22  ;;  %s1929_s24 = sadd.s32 4294967295, %s1599_s23   ;;  %s1599_s23 = sphi %s1650_s23, %s24_s23   ;;  %s1595_s22 = sphi %s1648_s22, %s1946_s22   ;;  %s1591_s21 = sphi %s1646_s21, %s1945_s21   ;;  %s1587_s20 = sphi %s1644_s20, %s1949_s20   ;;  %s1583_s19 = sphi %s1642_s19, %s1948_s19   ;;  %s1579_s18 = sphi %s1640_s18, %s1947_s18  }
   0xc   : > { %s36_s25 = sadd.s32 1, %s1595_s22  ;;  %s45_s26 = sadd.s32 1, %s1587_s20 }
   0xd   : > { %p38_p0 = scmp.ge.s32.totalorder %s36_s25, 2  ;;  %p52_p1 = scmp.ne.s32.totalorder %s1587_s20, %s1583_s19 }
   0xe   : > { %p53_p2 = scmp.eq.s32.totalorder %s1599_s23, 0  ;;  %p58_p4 = scmp.ne.s32.totalorder %s1583_s19, %s1579_s18 }
   0xf   : > { %s1951_s25 = smov (%p38_p0, %s36_s25), 0  ;;  %p59_p5 = scmp.eq.s32.totalorder %s1929_s24, 0 }
  0x10   : > { %1936 = sst [smem:[#allocation15_spill]] %s1951_s25  ;;  %p54_p3 = por %p53_p2, %p52_p1 }
  0x11   : > { %s40_s27 = ssub.s32 %s1595_s22, %s1951_s25  ;;  %p1681_p7 = por %p59_p5, %p58_p4 }
  0x12   : > { %p43_p6 = scmp.eq.s32.totalorder %s40_s27, 0  ;;  %p1346_p8 = scmp.lt.s32.totalorder %s1599_s23, 2 }
  0x13   : > { %s1930_s30 = sand.u32 1, %s1587_s20   ;;  %s1691_s6 = sshll.u32 %s1595_s22, 8 }
  0x14   : > { %s1687_s29 = scalar_select %p43_p6, %s1587_s20, %s45_s26  }
  0x15   : > { %s1695_s7 = sshll.u32 %s1930_s30, 4  ;;  %p1697_p9 = pnand %p1346_p8, %p54_p3 }
  0x16   : > { %s241_s9 = sand.u32 1, %s1599_s23   ;;  %s1939_s1 = sld [smem:[#allocation16_spill]] }
  0x17   : > { %s245_s13 = scalar_lea.vmem [#allocation5], %s1695_s7  ;;  %p1290_p10 = scmp.ge.s32.totalorder %s1599_s23, 1 }
  0x18   : > { %s255_s14 = sshll.u32 %s245_s13, 4  ;;  %s1708_s15 = scalar_lea.sflag [#allocation6], %s241_s9  ;;  %s256_s14 = int_to_ptr.vmem [resolvable:$true] %s255_s14 }
  0x19   : > { %p1712_p11 = pneg %p1697_p9  ;;  %s1414_s17 = scalar_lea.vmem %s256_s14, 256 }
  0x1a   : > { %p1415_p12 = scmp.ne.s32.totalorder %s256_s14, %s1414_s17  ;;  %s1601_s18 = smov [#allocation5]  }
  0x1b   : > { %s1419_s26 = sshll.u32 %s1601_s18, 4  ;;  %s1420_s26 = int_to_ptr.vmem [resolvable:$false] %s1419_s26 }
  0x1c   : > { %s253_s12 = scalar_lea.hbm %s1939_s1, %s1691_s6  ;;  %p1417_p13 = pnand %p1415_p12, %p1712_p11 }
  0x1d   : > { %s1421_s27 = scalar_lea.vmem %s1420_s26, 512  ;;  %p1422_p1 = scmp.lt.s32.totalorder %s256_s14, %s1420_s26 }
  0x1e   : > { %p1418_p0 = pneg %p1417_p13  ;;  %p1423_p2 = scmp.lt.s32.totalorder %s1421_s27, %s1414_s17 }
  0x20   : > { %p1424_p3 = por %p1423_p2, %p1422_p1 }
  0x22   : > { %p1425_p4 = pnand %p1424_p3, %p1418_p0 }
  0x24   : > { %1428 = shalt.err (!%p1425_p4)
}
  0x25   : > { %1336 = dma.hbm_to_vmem [thread:$0]  (!%p1697_p9), %s253_s12, 256, %s256_s14, %s1708_s15  }
  0x26   : > { %p323_p5 = scmp.lt.s32.totalorder %s1599_s23, 3  ;;  %s1941_s3 = sld [smem:[#allocation17_spill]] }
  0x27   : > { %s287_s18 = scalar_lea.vmem [#allocation8], %s1695_s7  ;;  %s1733_s27 = scalar_lea.sflag [#allocation9], %s241_s9 }
  0x28   : > { %p1728_p6 = pnand %p1290_p10, %p323_p5  ;;  %s297_s26 = sshll.u32 %s287_s18, 4  ;;  %s298_s26 = int_to_ptr.vmem [resolvable:$true] %s297_s26 }
  0x29   : > { %s1442_s24 = scalar_lea.vmem %s298_s26, 256  ;;  %s1602_s12 = smov [#allocation8]  }
  0x2a   : > { %p1443_p8 = scmp.ne.s32.totalorder %s298_s26, %s1442_s24  ;;  %s1447_s14 = sshll.u32 %s1602_s12, 4  ;;  %s1448_s14 = int_to_ptr.vmem [resolvable:$false] %s1447_s14 }
  0x2b   : > { %s1449_s10 = scalar_lea.vmem %s1448_s14, 512  ;;  %p1450_p0 = scmp.lt.s32.totalorder %s298_s26, %s1448_s14 }
  0x2c   : > { %s295_s13 = scalar_lea.hbm %s1941_s3, %s1691_s6  ;;  %p1445_p12 = pnand %p1443_p8, %p1712_p11 }
  0x2d   : > { %p1451_p1 = scmp.lt.s32.totalorder %s1449_s10, %s1442_s24 }
  0x2e   : > { %p1446_p13 = pneg %p1445_p12 }
  0x2f   : > { %p1452_p10 = por %p1451_p1, %p1450_p0 }
  0x31   : > { %p1453_p2 = pnand %p1452_p10, %p1446_p13 }
  0x33   : > { %1456 = shalt.err (!%p1453_p2)
}
  0x34   : > { %1342 = dma.hbm_to_vmem [thread:$0]  (!%p1697_p9), %s295_s13, 256, %s298_s26, %s1733_s27  }
  0x35   : > { %s232_s18 = scalar_lea.hbm %s1923_s0, %s1691_s6  ;;  %s224_s12 = scalar_lea.vmem [#allocation3], %s1695_s7 }
  0x36   : > { %s234_s30 = sshll.u32 %s224_s12, 4  ;;  %s274_s10 = scalar_lea.hbm %s1925_s2, %s1691_s6  ;;  %s235_s30 = int_to_ptr.vmem [resolvable:$true] %s234_s30 }
  0x37   : > { %s1943_s1 = sand.u32 1, %s1587_s20   ;;  %s1470_s25 = scalar_lea.vmem %s235_s30, 256 }
  0x38   : > { %s221_s3 = scalar_lea.sflag [#allocation4], %s1943_s1  ;;  %p1471_p3 = scmp.ne.s32.totalorder %s235_s30, %s1470_s25 }
  0x39   : > { %s1603_s22 = smov [#allocation3]  }
  0x3a   : > { %p1473_p4 = pnand %p1471_p3, %p1712_p11  ;;  %s1475_s13 = sshll.u32 %s1603_s22, 4  ;;  %s1476_s13 = int_to_ptr.vmem [resolvable:$false] %s1475_s13 }
  0x3b   : > { %s1477_s26 = scalar_lea.vmem %s1476_s13, 512  ;;  %p1478_p8 = scmp.lt.s32.totalorder %s235_s30, %s1476_s13 }
  0x3c   : > { %p1474_p5 = pneg %p1473_p4  ;;  %p1479_p12 = scmp.lt.s32.totalorder %s1477_s26, %s1470_s25 }
  0x3e   : > { %p1480_p13 = por %p1479_p12, %p1478_p8 }
  0x40   : > { %p1481_p0 = pnand %p1480_p13, %p1474_p5 }
  0x42   : > { %1484 = shalt.err (!%p1481_p0)
}
  0x43   : > { %1333 = dma.hbm_to_vmem [thread:$0]  (!%p1697_p9), %s232_s18, 256, %s235_s30, %s221_s3  }
  0x44   : > { %s266_s1 = scalar_lea.vmem [#allocation7], %s1695_s7  ;;  %s316_s22 = scalar_lea.hbm %s1927_s4, %s1691_s6 }
  0x45   : > { %s276_s9 = sshll.u32 %s266_s1, 4  ;;  %s1604_s25 = smov [#allocation7]   ;;  %s277_s9 = int_to_ptr.vmem [resolvable:$true] %s276_s9 }
  0x46   : > { %s1498_s24 = scalar_lea.vmem %s277_s9, 256  ;;  %s1503_s14 = sshll.u32 %s1604_s25, 4  ;;  %s1504_s14 = int_to_ptr.vmem [resolvable:$false] %s1503_s14 }
  0x47   : > { %p1499_p1 = scmp.ne.s32.totalorder %s277_s9, %s1498_s24  ;;  %s1505_s13 = scalar_lea.vmem %s1504_s14, 512 }
  0x48   : > { %p1506_p3 = scmp.lt.s32.totalorder %s277_s9, %s1504_s14  ;;  %p1507_p4 = scmp.lt.s32.totalorder %s1505_s13, %s1498_s24 }
  0x49   : > { %p1501_p10 = pnand %p1499_p1, %p1712_p11 }
  0x4a   : > { %p1508_p5 = por %p1507_p4, %p1506_p3 }
  0x4b   : > { %p1502_p2 = pneg %p1501_p10 }
  0x4d   : > { %p1509_p8 = pnand %p1508_p5, %p1502_p2 }
  0x4f   : > { %1512 = shalt.err (!%p1509_p8)
}
  0x50   : > { %1339 = dma.hbm_to_vmem [thread:$0]  (!%p1697_p9), %s274_s10, 256, %s277_s9, %s1708_s15  }
  0x51   : > { %s308_s18 = scalar_lea.vmem [#allocation10], %s1695_s7  ;;  %s1605_s11 = smov [#allocation10]  }
  0x52   : > { %s318_s26 = sshll.u32 %s308_s18, 4  ;;  %s1531_s12 = sshll.u32 %s1605_s11, 4  ;;  %s319_s26 = int_to_ptr.vmem [resolvable:$true] %s318_s26  ;;  %s1532_s12 = int_to_ptr.vmem [resolvable:$false] %s1531_s12 }
  0x53   : > { %s1526_s1 = scalar_lea.vmem %s319_s26, 256  ;;  %s1533_s24 = scalar_lea.vmem %s1532_s12, 512 }
  0x54   : > { %p1527_p12 = scmp.ne.s32.totalorder %s319_s26, %s1526_s1  ;;  %p1534_p1 = scmp.lt.s32.totalorder %s319_s26, %s1532_s12 }
  0x55   : > { %p1535_p10 = scmp.lt.s32.totalorder %s1533_s24, %s1526_s1 }
  0x56   : > { %p1529_p13 = pnand %p1527_p12, %p1712_p11 }
  0x57   : > { %p1536_p2 = por %p1535_p10, %p1534_p1 }
  0x58   : > { %p1530_p0 = pneg %p1529_p13 }
  0x5a   : > { %p1537_p3 = pnand %p1536_p2, %p1530_p0 }
  0x5c   : > { %1540 = shalt.err (!%p1537_p3)
}
  0x5d   : > { %1345 = dma.hbm_to_vmem [thread:$0]  (!%p1697_p9), %s316_s22, 256, %s319_s26, %s1733_s27  }
  0x5e   : > { %327 = sbr.rel (%p1728_p6) target bundleno = 356 (0x164), region = 40  ;;  %s329_s16 = sand.u32 (!%p1728_p6), 1, %s1583_s19  }
  0x5f   : > { %s1784_s10 = sshll.u32 (!%p1728_p6), %s329_s16, 4  ;;  %s330_s9 = scalar_lea.sflag (!%p1728_p6), [#allocation4], %s329_s16 }
  0x60   : > { %s333_s25 = scalar_lea.vmem (!%p1728_p6), [#allocation3], %s1784_s10 }
  0x63   : > { %1566 = dma.done.wait (%p1681_p7), %s330_s9, 256  }
  0x64   : > { %1568 = vsyncadd (%p1681_p7), %s330_s9, 4294967040  ;;  %s1944_s8 = sadd.s32 4294967295, %s1599_s23   ;;  %s342_s27 = scalar_lea.vmem [#allocation5], %s1784_s10 }
  0x65   : > { %s338_s6 = sand.u32 1, %s1944_s8  }
  0x66   : > { %s339_s17 = scalar_lea.sflag [#allocation6], %s338_s6 }
  0x67   : > { %1570 = dma.done.wait (%p1681_p7), %s339_s17, 512  }
  0x68   : > { %1572 = vsyncadd (%p1681_p7), %s339_s17, 4294966784  ;;  %s351_s22 = scalar_lea.vmem [#allocation7], %s1784_s10  ;;  %s357_s14 = scalar_lea.sflag [#allocation9], %s338_s6 }
  0x69   : > { %s360_s13 = scalar_lea.vmem [#allocation8], %s1784_s10 }
  0x6a   : > { %1574 = dma.done.wait (%p1681_p7), %s357_s14, 512  }
  0x6b   : > { %1576 = vsyncadd (%p1681_p7), %s357_s14, 4294966784  ;;  %v463_v0 = vlaneseq  ;;  %v1606_v1 = vmov 0.0   ;;  %v1607_v2 = vmov 1983009808   ;;  %v1608_v5 = vmov 1.0   ;;  %v451_v11 = vld [vmem:[%s333_s25] sm:$0xff] }
  0x6c   : > { %442 = vst [vmem:[#allocation2 + $0x48] sm:$0xff] %v1606_v1  ;;  %v461_v3 = vunpack.c.l.s4 %v1607_v2  ;;  %433 = vst [vmem:[#allocation2] sm:$0xff] %v1606_v1  ;;  %v1609_v6 = vmov 1966171168   ;;  %v453_v12 = vld [vmem:[%s342_s27] sm:$0xff]  ;;  %s369_s28 = scalar_lea.vmem [#allocation10], %s1784_s10 }
  0x6d   : > { %434 = vst [vmem:[#allocation2 + $0x8] sm:$0xff] %v1606_v1  ;;  %435 = vst [vmem:[#allocation2 + $0x10] sm:$0xff] %v1606_v1  ;;  %v464_v4 = vshrl.u32 %v463_v0, 7  ;;  %v754_v7 = vunpack.c.l.s4 %v1609_v6  ;;  %v509_v13 = vld [vmem:[%s351_s22] sm:$0xff]  ;;  %v455_v14 = vsub.f32 %v451_v11, %v453_v12  ;;  %v1831_v18 = vld [vmem:[%s369_s28 + $0x8] sm:$0xff]  ;;  %p421_p7 = scmp.lt.s32.totalorder %s1591_s21, 1 }
  0x6e   : > { %436 = vst [vmem:[#allocation2 + $0x18] sm:$0xff] %v1606_v1  ;;  %437 = vst [vmem:[#allocation2 + $0x20] sm:$0xff] %v1606_v1  ;;  %v462_v8 = vunpack.c.0.s8 %v461_v3  ;;  %v511_v15 = vsub.f32 %v451_v11, %v509_v13  ;;  %v565_v16 = vld [vmem:[%s360_s13] sm:$0xff]  ;;  %v1838_v28 = vld [vmem:[%s360_s13 + $0x8] sm:$0xff]  ;;  %v1311_v31 = vrot.slane %v1831_v18, 9  ;;  %vm430_vm0 = vcmask 130048  }
  0x6f   : > { %438 = vst [vmem:[#allocation2 + $0x28] sm:$0xff] %v1606_v1  ;;  %439 = vst [vmem:[#allocation2 + $0x30] sm:$0xff] %v1606_v1  ;;  %v755_v9 = vunpack.c.0.s8 %v754_v7  ;;  %v619_v17 = vld [vmem:[%s369_s28] sm:$0xff]  ;;  %v569_v20 = vcombine.low %v565_v16, %v565_v16  ;;  %v459_v26 = vcombine.high %v455_v14, %v455_v14  ;;  %v452_v41 = vld [vmem:[%s333_s25 + $0x8] sm:$0xff]  ;;  %v586_v59 = vcombine.low %v1838_v28, %v1838_v28  ;;  %s1953_s21 = smov (!%p421_p7, %s1591_s21), 1 }
  0x70   : > { %440 = vst [vmem:[#allocation2 + $0x38] sm:$0xff] %v1606_v1  ;;  %441 = vst [vmem:[#allocation2 + $0x40] sm:$0xff] %v1606_v1  ;;  %v1820_v10 = vsub.s32 %v462_v8, %v464_v4  ;;  %v681_v22 = vmul.f32 %v619_v17, %v619_v17  ;;  %v1310_v23 = vrot.slane %v619_v17, 9  ;;  %v515_v25 = vcombine.low %v511_v15, %v511_v15  ;;  %v454_v42 = vld [vmem:[%s342_s27 + $0x8] sm:$0xff]  ;;  %s1319_s3 = sshll.u32 %s1953_s21, 4 }
  0x71   : > { %443 = vst [vmem:[#allocation2 + $0x50] sm:$0xff] %v1606_v1  ;;  %444 = vst [vmem:[#allocation2 + $0x58] sm:$0xff] %v1606_v1  ;;  %v758_v19 = vsub.s32 %v755_v9, %v464_v4  ;;  %v750_v39 = vmul.f32 %v1311_v31, %v1831_v18  ;;  %v510_v47 = vld [vmem:[%s351_s22 + $0x8] sm:$0xff]  ;;  %v623_v51 = vcombine.high %v619_v17, %v619_v17  ;;  %s1891_s26 = scalar_lea.vmem %s1928_s5, %s1319_s3 }
  0x72   : > { %445 = vst [vmem:[#allocation2 + $0x60] sm:$0xff] %v1606_v1  ;;  %446 = vst [vmem:[#allocation2 + $0x68] sm:$0xff] %v1606_v1  ;;  %v630_v21 = vrot.slane %v619_v17, %v1820_v10  ;;  %v466_v24 = vrot.slane %v455_v14, %v1820_v10  ;;  %v529_v27 = vrot.slane %v511_v15, %v1820_v10 }
  0x73   : > { %447 = vst [vmem:[#allocation2 + $0x70] sm:$0xff] %v1606_v1  ;;  %448 = vst [vmem:[#allocation2 + $0x78] sm:$0xff] %v1606_v1  ;;  %v692_v30 = vrot.slane %v681_v22, %v1820_v10  ;;  %v749_v32 = vmul.f32 %v1310_v23, %v619_v17  ;;  %v522_v34 = vrot.slane %v515_v25, %v1820_v10 }
  0x74   : > { %449 = vst [vmem:[#allocation2] ss:$8 sm:$0xf] %v1608_v5  ;;  %450 = vst [vmem:[#allocation2] ss:$8 sm:$0xf0] %v1608_v5  ;;  %v638_v29 = vcombine.high %v630_v21, %v630_v21  ;;  %v474_v33 = vcombine.high %v466_v24, %v466_v24  ;;  %v473_v35 = vrot.slane %v459_v26, %v1820_v10 }
  0x75   : > { %1307 = vst.sshfl [vmem:[#allocation2 + $0x18] sm:$0xc0 pattern:$0x76325410] %v565_v16  ;;  %v531_v36 = vcombine.high %v529_v27, %v529_v27  ;;  %v700_v38 = vcombine.high %v692_v30, %v692_v30  ;;  %v759_v40 = vrot.slane %v749_v32, %v758_v19  ;;  %v530_v43 = vcombine.high %v522_v34, %v522_v34 }
  0x76   : > { %1298 = vst.sshfl [vmem:[#allocation2 + $0x40] sm:$0x3 pattern:$0x76325410] %v455_v14  ;;  %v658_v37 = vrot.slane %v638_v29, 7  ;;  %v475_v44 = vcombine.high %v473_v35, %v473_v35  ;;  %v576_v45 = vrot.slane %v569_v20, %v1820_v10  ;;  %v657_v46 = vrot.slane %v630_v21, 7 }
  0x77   : > { %1303 = vst.sshfl [vmem:[#allocation2 + $0x50] sm:$0x30 pattern:$0x76325410] %v511_v15  ;;  %502 = vst [vmem:[#allocation2 + $0x48] sm:$0x3] %v474_v33  ;;  %v766_v49 = vrot.slane %v750_v39, %v758_v19  ;;  %v685_v53 = vcombine.high %v681_v22, %v681_v22  ;;  %v583_v54 = vrot.slane %v565_v16, %v1820_v10 }
  0x78   : > { %1306 = vst.sshfl [vmem:[#allocation2 + $0x8] sm:$0xc0 pattern:$0x76325410] %v569_v20  ;;  %560 = vst [vmem:[#allocation2 + $0x58] sm:$0xc] %v531_v36  ;;  %v584_v52 = vcombine.low %v576_v45, %v576_v45  ;;  %v456_v55 = vsub.f32 %v452_v41, %v454_v42  ;;  %v637_v57 = vrot.slane %v623_v51, %v1820_v10 }
  0x79   : > { %1309 = vst.sshfl [vmem:[#allocation2 + $0x38] sm:$0xc0 pattern:$0x76325410] %v1838_v28  ;;  %674 = vst [vmem:[#allocation2 + $0x8] sm:$0x6] %v658_v37  ;;  %v767_v56 = vcombine.low %v759_v40, %v766_v49  ;;  %v512_v58 = vsub.f32 %v452_v41, %v510_v47  ;;  %v699_v60 = vrot.slane %v685_v53, %v1820_v10 }
  0x7a   : > { %1302 = vst.sshfl [vmem:[#allocation2 + $0x40] sm:$0x30 pattern:$0x76325410] %v515_v25  ;;  %v720_v48 = vrot.slane %v700_v38, 5  ;;  %v719_v50 = vrot.slane %v692_v30, 5  ;;  %v585_v61 = vcombine.low %v583_v54, %v583_v54  ;;  %v483_v62 = vrot.slane %v456_v55, %v1820_v10 }
  0x7b   : > { %1299 = vst.sshfl [vmem:[#allocation2 + $0x50] sm:$0x3 pattern:$0x76325410] %v459_v26  ;;  %558 = vst [vmem:[#allocation2 + $0x48] sm:$0xc] %v530_v43  ;;  %v476_v63 = vcombine.high %v456_v55, %v456_v55  ;;  %v639_v0 = vcombine.high %v637_v57, %v637_v57  ;;  %v532_v3 = vcombine.low %v512_v58, %v512_v58 }
  0x7c   : > { %504 = vst [vmem:[#allocation2 + $0x58] sm:$0x3] %v475_v44  ;;  %673 = vst [vmem:[#allocation2] sm:$0x6] %v657_v46  ;;  %v659_v2 = vrot.slane %v637_v57, 7  ;;  %v546_v4 = vrot.slane %v512_v58, %v1820_v10  ;;  %v701_v5 = vcombine.high %v699_v60, %v699_v60  ;;  %v721_v6 = vrot.slane %v699_v60, 5 }
  0x7d   : > { %736 = vst [vmem:[#allocation2 + $0x8] sm:$0x18] %v720_v48  ;;  %735 = vst [vmem:[#allocation2] sm:$0x18] %v719_v50  ;;  %v491_v7 = vcombine.high %v483_v62, %v483_v62  ;;  %v490_v8 = vrot.slane %v476_v63, %v1820_v10  ;;  %v660_v9 = vrot.slane %v639_v0, 7  ;;  %v539_v11 = vrot.slane %v532_v3, %v1820_v10 }
  0x7e   : > { %611 = vst [vmem:[#allocation2] sm:$0xc0] %v584_v52  ;;  %1300 = vst.sshfl [vmem:[#allocation2 + $0x60] sm:$0x3 pattern:$0x76325410] %v456_v55  ;;  %v548_v12 = vcombine.high %v546_v4, %v546_v4  ;;  %v593_v13 = vrot.slane %v586_v59, %v1820_v10  ;;  %v647_v19 = vrot.slane %v1831_v18, %v1820_v10 }
  0x7f   : > { %770 = vst [vmem:[#allocation2 + $0x5] ss:$8 sm:$0xf] %v767_v56  ;;  %771 = vst [vmem:[#allocation2 + $0x5] ss:$8 sm:$0xf0] %v767_v56  ;;  %v492_v17 = vcombine.high %v490_v8, %v490_v8  ;;  %v682_v20 = vmul.f32 %v1831_v18, %v1831_v18  ;;  %v547_v23 = vcombine.high %v539_v11, %v539_v11 }
  0x80   : > { %1305 = vst.sshfl [vmem:[#allocation2 + $0x70] sm:$0x30 pattern:$0x76325410] %v512_v58  ;;  %613 = vst [vmem:[#allocation2 + $0x10] sm:$0xc0] %v585_v61  ;;  %v601_v24 = vcombine.low %v593_v13, %v593_v13  ;;  %v640_v25 = vcombine.high %v1831_v18, %v1831_v18  ;;  %v600_v26 = vrot.slane %v1838_v28, %v1820_v10 }
  0x81   : > { %1308 = vst.sshfl [vmem:[#allocation2 + $0x28] sm:$0xc0 pattern:$0x76325410] %v586_v59  ;;  %675 = vst [vmem:[#allocation2 + $0x10] sm:$0x6] %v659_v2  ;;  %v655_v27 = vcombine.high %v647_v19, %v647_v19  ;;  %v709_v29 = vrot.slane %v682_v20, %v1820_v10  ;;  %v702_v31 = vcombine.high %v682_v20, %v682_v20 }
  0x82   : > { %1301 = vst.sshfl [vmem:[#allocation2 + $0x70] sm:$0x3 pattern:$0x76325410] %v476_v63  ;;  %v1863_v14 = vld [vmem:[#allocation2 + $0x40] sm:$0xff]  ;;  %v1865_v15 = vld [vmem:[#allocation2 + $0x50] sm:$0xff]  ;;  %v654_v18 = vrot.slane %v640_v25, %v1820_v10  ;;  %v602_v32 = vcombine.low %v600_v26, %v600_v26 }
  0x83   : > { %1304 = vst.sshfl [vmem:[#allocation2 + $0x60] sm:$0x30 pattern:$0x76325410] %v532_v3  ;;  %v722_v16 = vrot.slane %v701_v5, 5  ;;  %v781_v21 = vld [vmem:[#allocation2 + $0x48] sm:$0xff]  ;;  %v717_v35 = vcombine.high %v709_v29, %v709_v29  ;;  %v716_v37 = vrot.slane %v702_v31, %v1820_v10 }
  0x84   : > { %737 = vst [vmem:[#allocation2 + $0x10] sm:$0x18] %v721_v6  ;;  %506 = vst [vmem:[#allocation2 + $0x68] sm:$0x3] %v491_v7  ;;  %v1871_v22 = vld [vmem:[#allocation2 + $0x58] sm:$0xff]  ;;  %818 = vmatprep.subr.mxu0 %v781_v21  ;;  %v661_v30 = vrot.slane %v647_v19, 7  ;;  %v656_v38 = vcombine.high %v654_v18, %v654_v18 }
  0x85   : > { %676 = vst [vmem:[#allocation2 + $0x18] sm:$0x6] %v660_v9  ;;  %564 = vst [vmem:[#allocation2 + $0x78] sm:$0xc] %v548_v12  ;;  %893 = vmatprep.subr.mxu1 %v1871_v22  ;;  %819 = vmatpush1.xpose.msra.mxu0 %v1863_v14  ;;  %v662_v34 = vrot.slane %v655_v27, 7  ;;  %v723_v36 = vrot.slane %v709_v29, 5  ;;  %v718_v41 = vcombine.high %v716_v37, %v716_v37 }
  0x86   : > { %738 = vst [vmem:[#allocation2 + $0x18] sm:$0x18] %v722_v16  ;;  %508 = vst [vmem:[#allocation2 + $0x78] sm:$0x3] %v492_v17  ;;  %894 = vmatpush1.xpose.msra.mxu1 %v1865_v15  ;;  %v773_v28 = vld [vmem:[#allocation2 + $0x8] sm:$0xff]  ;;  %v772_v33 = vld [vmem:[#allocation2] sm:$0xff] }
  0x87   : > { %562 = vst [vmem:[#allocation2 + $0x68] sm:$0xc] %v547_v23  ;;  %615 = vst [vmem:[#allocation2 + $0x20] sm:$0xc0] %v601_v24  ;;  %820 = vmatprep.subr.mxu0 %v773_v28  ;;  %854 = vmatprep.mubr.f32.mxu0 %v773_v28  ;;  %v663_v39 = vrot.slane %v654_v18, 7  ;;  %v724_v40 = vrot.slane %v717_v35, 5 }
  0x88   : > { %677 = vst [vmem:[#allocation2 + $0x20] sm:$0x6] %v661_v30  ;;  %617 = vst [vmem:[#allocation2 + $0x30] sm:$0xc0] %v602_v32  ;;  %v725_v42 = vrot.slane %v716_v37, 5  ;;  %v664_v43 = vrot.slane %v656_v38, 7 }
  0x89   : > { %678 = vst [vmem:[#allocation2 + $0x28] sm:$0x6] %v662_v34  ;;  %739 = vst [vmem:[#allocation2 + $0x20] sm:$0x18] %v723_v36  ;;  %821 = vmatpush1.xpose.msra.mxu0 %v772_v33  ;;  %v726_v45 = vrot.slane %v718_v41, 5  ;;  %v786_v49 = vld [vmem:[#allocation2 + $0x70] sm:$0xff] }
  0x8a   : > { %679 = vst [vmem:[#allocation2 + $0x30] sm:$0x6] %v663_v39  ;;  %740 = vst [vmem:[#allocation2 + $0x28] sm:$0x18] %v724_v40  ;;  %v784_v48 = vld [vmem:[#allocation2 + $0x60] sm:$0xff] }
  0x8b   : > { %v774_v44 = vld [vmem:[#allocation2 + $0x10] sm:$0xff]  ;;  %741 = vst [vmem:[#allocation2 + $0x30] sm:$0x18] %v725_v42  ;;  %680 = vst [vmem:[#allocation2 + $0x38] sm:$0x6] %v664_v43 }
  0x8c   : > { %855 = vmatmul.mubr.f32.vlgmr.msra.gmra.mxu0 %v772_v33  ;;  %742 = vst [vmem:[#allocation2 + $0x38] sm:$0x18] %v726_v45  ;;  %431 = vst.msk [vmem:[%s1891_s26] sm:$0xff] %vm430_vm0, %v1606_v1 }
  0x8d   : > { %v775_v46 = vld [vmem:[#allocation2 + $0x18] sm:$0xff]  ;;  %859 = vmatprep.mubr.f32.mxu0 %v781_v21  ;;  %432 = vst.msk [vmem:[%s1891_s26 + $0x8] sm:$0xff] %vm430_vm0, %v1606_v1 }
  0x8e   : > { %v787_v47 = vld [vmem:[#allocation2 + $0x78] sm:$0xff]  ;;  %895 = vmatprep.subr.mxu1 %v775_v46  ;;  %v785_v10 = vld [vmem:[#allocation2 + $0x68] sm:$0xff]  ;;  %929 = vmatprep.mubr.f32.mxu1 %v775_v46 }
  0x8f   : > { %896 = vmatpush1.xpose.msra.mxu1 %v774_v44  ;;  %968 = vmatprep.subr.mxu0 %v785_v10 }
  0x90   : > { %1043 = vmatprep.subr.mxu1 %v787_v47  ;;  %969 = vmatpush1.xpose.msra.mxu0 %v784_v48  ;;  %v776_v50 = vld [vmem:[#allocation2 + $0x20] sm:$0xff] }
  0x91   : > { %860 = vmatmul.mubr.f32.gmra.mxu0 %v1863_v14  ;;  %v777_v51 = vld [vmem:[#allocation2 + $0x28] sm:$0xff] }
  0x92   : > { %930 = vmatmul.mubr.f32.vlgmr.msra.gmra.mxu1 %v774_v44  ;;  %970 = vmatprep.subr.mxu0 %v777_v51  ;;  %v778_v52 = vld [vmem:[#allocation2 + $0x30] sm:$0xff] }
  0x93   : > { %1044 = vmatpush1.xpose.msra.mxu1 %v786_v49  ;;  %934 = vmatprep.mubr.f32.mxu1 %v1871_v22  ;;  %v779_v53 = vld [vmem:[#allocation2 + $0x38] sm:$0xff]  ;;  %v788_v2 = vld [vmem:[%s1891_s26] sm:$0xff] }
  0x94   : > { %1004 = vmatprep.mubr.f32.mxu0 %v777_v51  ;;  %971 = vmatpush1.xpose.msra.mxu0 %v776_v50  ;;  %v789_v11 = vld [vmem:[%s1891_s26 + $0x8] sm:$0xff] }
  0x95   : > { %1045 = vmatprep.subr.mxu1 %v779_v53 }
  0x96   : > { %935 = vmatmul.mubr.f32.gmra.mxu1 %v1865_v15 }
  0x97   : > { %1046 = vmatpush1.xpose.msra.mxu1 %v778_v52  ;;  %1079 = vmatprep.mubr.f32.mxu1 %v779_v53 }
  0x98   : > { %1005 = vmatmul.mubr.f32.vlgmr.msra.gmra.mxu0 %v776_v50 }
  0x99   : > { %1009 = vmatprep.mubr.f32.mxu0 %v785_v10 }
  0x9a   : > { %1080 = vmatmul.mubr.f32.vlgmr.msra.gmra.mxu1 %v778_v52 }
  0x9b   : > { %1084 = vmatprep.mubr.f32.mxu1 %v787_v47 }
  0x9c   : > { %1010 = vmatmul.mubr.f32.gmra.mxu0 %v784_v48 }
  0x9e   : > { %1085 = vmatmul.mubr.f32.gmra.mxu1 %v786_v49 }
 0x14c   : > { %v856_v54 = vpop.f32.mrf.mxu0 }
 0x14e   : > { %v858_v55 = vpop.f32.mrf.mxu0 }
 0x151   : > { %v861_v57 = vpop.f32.mrf.mxu0 }
 0x152   : > { %v931_v56 = vpop.f32.mrf.mxu1 }
 0x153   : > { %v863_v59 = vpop.f32.mrf.mxu0  ;;  %v932_v61 = vadd.f32 %v931_v56, %v856_v54 }
 0x154   : > { %v933_v58 = vpop.f32.mrf.mxu1 }
 0x156   : > { %v936_v60 = vpop.f32.mrf.mxu1 }
 0x157   : > { %v937_v5 = vadd.f32 %v936_v60, %v861_v57 }
 0x158   : > { %v938_v62 = vpop.f32.mrf.mxu1  ;;  %v1006_v63 = vpop.f32.mrf.mxu0 }
 0x159   : > { %v1007_v0 = vadd.f32 %v1006_v63, %v932_v61 }
 0x15a   : > { %v1081_v3 = vpop.f32.mrf.mxu1  ;;  %v1008_v4 = vpop.f32.mrf.mxu0 }
 0x15b   : > { %v1082_v6 = vadd.f32 %v1081_v3, %v1007_v0 }
 0x15c   : > { %v1083_v1 = vpop.f32.mrf.mxu1  ;;  %v1011_v7 = vpop.f32.mrf.mxu0 }
 0x15d   : > { %v1090_v8 = vadd.f32 %v1082_v6, %v788_v2  ;;  %v1012_v9 = vadd.f32 %v1011_v7, %v937_v5 }
 0x15e   : > { %v1086_v12 = vpop.f32.mrf.mxu1  ;;  %v1013_v13 = vpop.f32.mrf.mxu0 }
 0x15f   : > { %1093 = vst.msk [vmem:[%s1891_s26] sm:$0xff] %vm430_vm0, %v1090_v8  ;;  %v1087_v14 = vadd.f32 %v1086_v12, %v1012_v9 }
 0x160   : > { %v1088_v15 = vpop.f32.mrf.mxu1 }
 0x161   : > { %v1091_v16 = vadd.f32 %v1087_v14, %v789_v11 }
 0x163   : > { %1094 = vst.msk [vmem:[%s1891_s26 + $0x8] sm:$0xff] %vm430_vm0, %v1091_v16 }
 0x164 PF: > { %s24_s23 = sadd.s32 1, %s1599_s23   ;;  %s1945_s21 = sld [smem:[#allocation14_spill]] }
 0x165   : > { %p21_p9 = scmp.ge.s32.totalorder %s24_s23, 4   ;;  %s1946_s22 = sld [smem:[#allocation15_spill]] }
 0x166   : > { %s1947_s18 = smov %s1583_s19  ;;  %s1948_s19 = smov %s1587_s20 }
 0x167   : > { %s1949_s20 = smov %s1687_s29  ;;  %23 = sbr.rel (!%p21_p9) target bundleno = 11 (0xb), region = 133 }
 0x16c   :  { %1116 = vsyncpa [#allocation4], 1 }
 0x16d   :  { %1118 = vsyncpa [#allocation4 + $0x1], 1 }
 0x16e   :  { %1119 = vsyncpa [#allocation6], 1 }
 0x16f   :  { %1121 = vsyncpa [#allocation6 + $0x1], 1 }
 0x170   :  { %1122 = vsyncpa [#allocation9], 1 }
 0x171   :  { %1124 = vsyncpa [#allocation9 + $0x1], 1 }

</bundles_post_ra>
